<compile_context>
chip_gen: v5e
topology: v5e:2x2
jax: 0.10.0
libtpu: 0.0.40
codegen_flags: <defaults>
</compile_context>

<pallas_src>
import math
from functools import partial

import jax
import jax.numpy as jnp
from jax.experimental import pallas as pl
from jax.experimental.pallas import tpu as pltpu


def _round_up(v, m):
    return ((v + m - 1) // m) * m


def _gcn_fused_kernel(x_ref, w_ref, adj_ref, out_ref, acc_ref):
    # Grid = (row tiles "parallel", k reduction "arbitrary").
    # acc[i, :] = sum_k adj[i, k] @ (x[k, :] @ W)
    @pl.when(pl.program_id(1) == 0)
    def _init():
        acc_ref[...] = jnp.zeros_like(acc_ref)

    # support_k = x_k @ W, f32 accumulation on the MXU (x/W stay f32).
    support = jnp.dot(x_ref[...], w_ref[...], preferred_element_type=jnp.float32)

    # Downcast the support operand to adj's (streaming) dtype so the dominant
    # matmul runs the native MXU path; accumulation stays f32.
    acc_ref[...] += jnp.dot(
        adj_ref[...],
        support.astype(adj_ref.dtype),
        preferred_element_type=jnp.float32,
    )

    @pl.when(pl.program_id(1) == pl.num_programs(1) - 1)
    def _finalize():
        out_ref[...] = acc_ref[...].astype(out_ref.dtype)


@partial(jax.jit, static_argnames=("tm", "tk", "adj_dtype", "vmem_limit_bytes"))
def graph_convolution(
    x,
    weight,
    adj,
    *,
    tm=512,                       # output-row tile (sublane dim of adj)
    tk=2048,                      # reduction tile over adj columns (lane dim)
    adj_dtype=jnp.bfloat16,       # dominant-stream dtype; jnp.float32 for exact
    vmem_limit_bytes=48 * 1024 * 1024,
):
    """Fused GCN forward: adj @ (x @ weight), single tiled/pipelined kernel."""
    N, f_in = x.shape
    f_in_w, f_out = weight.shape
    assert f_in == f_in_w
    assert adj.shape == (N, N)

    out_dtype = x.dtype

    # Lane-dense output features: pad F_out up to a multiple of 128.
    f_out_p = max(128, _round_up(f_out, 128))

    # Tile sizes: (8, 128)-aligned, capped by the (padded) problem size.
    tm = min(tm, _round_up(N, 8))
    tk = min(tk, _round_up(N, 128))
    # v7x has 2 TensorCores; keep >= 2 row tiles so the "parallel" axis shards.
    if N > 16 and _round_up(N, tm) // tm < 2:
        tm = _round_up(pl.cdiv(N, 2), 8)
    n_rows_p = _round_up(N, tm)     # padded adj rows / output rows
    n_cols_p = _round_up(N, tk)     # padded adj cols / x rows

    # Downcast ONLY adj (the O(N^2) stream).  Cast-before-pad so the convert
    # and pad fuse under jit and no full-size f32 padded copy is materialized;
    # skip padding entirely when the tiles already divide the shapes.
    adj_c = adj.astype(adj_dtype)
    if (n_rows_p - N) or (n_cols_p - N):
        adj_c = jnp.pad(adj_c, ((0, n_rows_p - N), (0, n_cols_p - N)))
    x_p = jnp.pad(x, ((0, n_cols_p - N), (0, 0))) if (n_cols_p - N) else x
    w_p = (
        jnp.pad(weight, ((0, 0), (0, f_out_p - f_out)))
        if (f_out_p - f_out)
        else weight
    )

    n_row_tiles = n_rows_p // tm
    n_k_tiles = n_cols_p // tk

    adj_bytes = jnp.dtype(adj_dtype).itemsize
    x_bytes = jnp.dtype(x_p.dtype).itemsize
    out_bytes = jnp.dtype(out_dtype).itemsize

    out_p = pl.pallas_call(
        _gcn_fused_kernel,
        out_shape=jax.ShapeDtypeStruct((n_rows_p, f_out_p), out_dtype),
        grid_spec=pltpu.PrefetchScalarGridSpec(
            num_scalar_prefetch=0,
            grid=(n_row_tiles, n_k_tiles),
            in_specs=[
                pl.BlockSpec((tk, f_in), lambda i, k: (k, 0)),        # x k-tile
                pl.BlockSpec((f_in, f_out_p), lambda i, k: (0, 0)),   # W resident
                pl.BlockSpec((tm, tk), lambda i, k: (i, k)),          # adj stream
            ],
            out_specs=pl.BlockSpec((tm, f_out_p), lambda i, k: (i, 0)),
            scratch_shapes=[pltpu.VMEM((tm, f_out_p), jnp.float32)],
        ),
        compiler_params=pltpu.CompilerParams(
            dimension_semantics=("parallel", "arbitrary"),
            vmem_limit_bytes=vmem_limit_bytes,
        ),
        cost_estimate=pl.CostEstimate(
            flops=2 * n_rows_p * n_cols_p * f_out_p
            + 2 * n_row_tiles * n_cols_p * f_in * f_out_p,
            transcendentals=0,
            bytes_accessed=adj_c.size * adj_bytes
            + n_row_tiles * x_p.size * x_bytes
            + w_p.size * x_bytes
            + n_rows_p * f_out_p * out_bytes,
        ),
    )(x_p, w_p, adj_c)

    return out_p[:N, :f_out]


if __name__ == "__main__":
    # Small, deterministic problem matching the module's forward signature.
    N, in_features, out_features = 64, 32, 16
    key = jax.random.PRNGKey(0)
    k_x, k_adj, k_w = jax.random.split(key, 3)

    x = jax.random.normal(k_x, (N, in_features), dtype=jnp.float32)

    # Random symmetric, row-normalized adjacency (dense).
    a = (jax.random.uniform(k_adj, (N, N)) > 0.8).astype(jnp.float32)
    a = jnp.minimum(a + a.T + jnp.eye(N, dtype=jnp.float32), 1.0)
    adj = a / jnp.sum(a, axis=1, keepdims=True)

    # Parameter init mirroring reset_parameters(): U(-stdv, stdv), stdv=1/sqrt(F_out)
    stdv = 1.0 / math.sqrt(out_features)
    weight = jax.random.uniform(
        k_w, (in_features, out_features), minval=-stdv, maxval=stdv,
        dtype=jnp.float32,
    )

    ref = adj @ (x @ weight)

    # Exact path: adj kept in f32.
    out_f32 = jax.block_until_ready(
        graph_convolution(x, weight, adj, adj_dtype=jnp.float32)
    )
    assert out_f32.shape == (N, out_features)
    assert jnp.allclose(out_f32, ref, atol=1e-5, rtol=1e-5)

    # Default path: bf16 adj stream, f32 accumulation (MXU-native, 2x less HBM).
    out_def = jax.block_until_ready(graph_convolution(x, weight, adj))
    assert out_def.shape == (N, out_features)
    assert jnp.allclose(out_def, ref, atol=5e-2, rtol=5e-2)

    # Non-divisible N exercises padding + multi-(row x reduction) tiling, exact.
    N2 = 200
    x2 = jax.random.normal(k_x, (N2, in_features), dtype=jnp.float32)
    a2 = (jax.random.uniform(k_adj, (N2, N2)) > 0.8).astype(jnp.float32)
    a2 = jnp.minimum(a2 + a2.T + jnp.eye(N2, dtype=jnp.float32), 1.0)
    adj2 = a2 / jnp.sum(a2, axis=1, keepdims=True)
    out2 = jax.block_until_ready(
        graph_convolution(x2, weight, adj2, tm=64, tk=128, adj_dtype=jnp.float32)
    )
    ref2 = adj2 @ (x2 @ weight)
    assert out2.shape == (N2, out_features)
    assert jnp.allclose(out2, ref2, atol=1e-4, rtol=1e-4)

    print("KERNEL_OK")
</pallas_src>

<mosaic_0001>
module attributes {stable_mosaic.version = 11 : i64} {
  func.func @_gcn_fused_kernel(%arg0: i32, %arg1: i32, %arg2: memref<128x32xf32, #tpu.memory_space<vmem>>, %arg3: memref<32x128xf32, #tpu.memory_space<vmem>>, %arg4: memref<32x128xf32, #tpu.memory_space<vmem>>, %arg5: memref<32x128xf32, #tpu.memory_space<vmem>>, %arg6: memref<32x128xf32, #tpu.memory_space<vmem>>) attributes {dimension_semantics = [#tpu.dimension_semantics<parallel>, #tpu.dimension_semantics<arbitrary>], iteration_bounds = array<i64: 2, 1>, scalar_prefetch = 0 : i64, scratch_operands = 1 : i64, tpu.core_type = #tpu.core_type<tc>, window_params = [{transform_indices = @transform_0, window_bounds = array<i64: 128, 32>}, {pipeline_mode = #tpu.pipeline_mode<synchronous>, transform_indices = @transform_1, window_bounds = array<i64: 32, 128>}, {transform_indices = @transform_2, window_bounds = array<i64: 32, 128>}, {transform_indices = @transform_3, window_bounds = array<i64: 32, 128>}]} {
    %c0_i32 = arith.constant 0 : i32
    %0 = arith.cmpi eq, %arg1, %c0_i32 : i32
    %1 = arith.extui %0 : i1 to i32
    %c0_i32_0 = arith.constant 0 : i32
    %2 = arith.cmpi ne, %1, %c0_i32_0 : i32
    scf.if %2 {
      %cst_13 = arith.constant 0.000000e+00 : f32
      %14 = vector.broadcast %cst_13 : f32 to vector<32x128xf32>
      %c0_14 = arith.constant 0 : index
      %c0_15 = arith.constant 0 : index
      %15 = vector.load %arg6[%c0_14, %c0_15] : memref<32x128xf32, #tpu.memory_space<vmem>>, vector<32x128xf32>
      tpu.vector_store %arg6[%c0_14, %c0_15], %14 {strides = array<i32>} : memref<32x128xf32, #tpu.memory_space<vmem>>, vector<32x128xf32>,
    } else {
    }
    %c0 = arith.constant 0 : index
    %c0_1 = arith.constant 0 : index
    %3 = vector.load %arg2[%c0, %c0_1] : memref<128x32xf32, #tpu.memory_space<vmem>>, vector<128x32xf32>
    %c0_2 = arith.constant 0 : index
    %c0_3 = arith.constant 0 : index
    %4 = vector.load %arg3[%c0_2, %c0_3] : memref<32x128xf32, #tpu.memory_space<vmem>>, vector<32x128xf32>
    %cst = arith.constant dense<0.000000e+00> : vector<128x128xf32>
    %5 = tpu.matmul %3, %4, %cst {dimension_numbers = #tpu.dot_dimension_numbers<[1], [0], [0], [1], [0, 0, 1, 1], [], []>} : vector<128x32xf32>, vector<32x128xf32>, vector<128x128xf32> -> vector<128x128xf32>
    %c0_4 = arith.constant 0 : index
    %c0_5 = arith.constant 0 : index
    %6 = vector.load %arg6[%c0_4, %c0_5] : memref<32x128xf32, #tpu.memory_space<vmem>>, vector<32x128xf32>
    %c0_6 = arith.constant 0 : index
    %c0_7 = arith.constant 0 : index
    %7 = vector.load %arg4[%c0_6, %c0_7] : memref<32x128xf32, #tpu.memory_space<vmem>>, vector<32x128xf32>
    %cst_8 = arith.constant dense<0.000000e+00> : vector<32x128xf32>
    %8 = tpu.matmul %7, %5, %cst_8 {dimension_numbers = #tpu.dot_dimension_numbers<[1], [0], [0], [1], [0, 0, 1, 1], [], []>} : vector<32x128xf32>, vector<128x128xf32>, vector<32x128xf32> -> vector<32x128xf32>
    %9 = arith.addf %6, %8 : vector<32x128xf32>
    %c0_9 = arith.constant 0 : index
    %c0_10 = arith.constant 0 : index
    %10 = vector.load %arg6[%c0_9, %c0_10] : memref<32x128xf32, #tpu.memory_space<vmem>>, vector<32x128xf32>
    tpu.vector_store %arg6[%c0_9, %c0_10], %9 {strides = array<i32>} : memref<32x128xf32, #tpu.memory_space<vmem>>, vector<32x128xf32>,
    %c0_i32_11 = arith.constant 0 : i32
    %11 = arith.cmpi eq, %arg1, %c0_i32_11 : i32
    %12 = arith.extui %11 : i1 to i32
    %c0_i32_12 = arith.constant 0 : i32
    %13 = arith.cmpi ne, %12, %c0_i32_12 : i32
    scf.if %13 {
      %c0_13 = arith.constant 0 : index
      %c0_14 = arith.constant 0 : index
      %14 = vector.load %arg6[%c0_13, %c0_14] : memref<32x128xf32, #tpu.memory_space<vmem>>, vector<32x128xf32>
      %c0_15 = arith.constant 0 : index
      %c0_16 = arith.constant 0 : index
      %15 = vector.load %arg5[%c0_15, %c0_16] : memref<32x128xf32, #tpu.memory_space<vmem>>, vector<32x128xf32>
      tpu.vector_store %arg5[%c0_15, %c0_16], %14 {strides = array<i32>} : memref<32x128xf32, #tpu.memory_space<vmem>>, vector<32x128xf32>,
    } else {
    }
    return
  }
  func.func @transform_0(%arg0: i32, %arg1: i32) -> (i32, i32) {
    %c0_i32 = arith.constant 0 : i32
    %c0_i32_0 = arith.constant 0 : i32
    return %arg1, %c0_i32 : i32, i32
  }
  func.func @transform_1(%arg0: i32, %arg1: i32) -> (i32, i32) {
    %c0_i32 = arith.constant 0 : i32
    %c0_i32_0 = arith.constant 0 : i32
    %c0_i32_1 = arith.constant 0 : i32
    return %c0_i32, %c0_i32_0 : i32, i32
  }
  func.func @transform_2(%arg0: i32, %arg1: i32) -> (i32, i32) {
    %c0_i32 = arith.constant 0 : i32
    return %arg0, %arg1 : i32, i32
  }
  func.func @transform_3(%arg0: i32, %arg1: i32) -> (i32, i32) {
    %c0_i32 = arith.constant 0 : i32
    %c0_i32_0 = arith.constant 0 : i32
    return %arg0, %c0_i32 : i32, i32
  }
}

</mosaic_0001>

<bundles_post_ra>
// kernel: graph_convolution.1
= control target key start
LH: loop header
LB: loop body
LE: loop exit
PB: predicated region body
PF: predicated region fallthrough
CT: control target
= control target key end

     0   :  { %s620_s12 = smov 0   ;;  %s622_s13 = smov 0   ;;  %s732_s0 = inlined_call_operand.vmem [shape: f32[128,32], index: 0, kind: input, shape index: {}]   ;;  %s733_s1 = inlined_call_operand.vmem [shape: f32[32,128], index: 1, kind: input, shape index: {}]   ;;  %s734_s2 = inlined_call_operand.vmem [shape: f32[64,128], index: 2, kind: input, shape index: {}]   ;;  %s735_s3 = inlined_call_operand.vmem [shape: f32[64,128], index: 3, kind: output, shape index: {}]  }
   0x1   :  { %s624_s14 = smov 0  }
   0x2 LB: > { %s25_s15 = sadd.s32 1, %s594_s13  ;;  %p505_p0 = scmp.ge.s32.totalorder %s598_s14, 1  ;;  %s598_s14 = sphi %s624_s14, %s13_s14   ;;  %s594_s13 = sphi %s622_s13, %s737_s13   ;;  %s590_s12 = sphi %s620_s12, %s736_s12  }
   0x3   : > { %p27_p1 = scmp.ge.s32.totalorder %s25_s15, 2  ;;  %p166_p2 = scmp.lt.s32.totalorder %s598_s14, 3 }
   0x5   : > { %s739_s15 = smov (%p27_p1, %s25_s15), 0  ;;  %p167_p3 = pnand %p505_p0, %p166_p2 }
   0x6   : > { %s506_s6 = sshll.u32 (!%p167_p3), %s590_s12, 2 }
   0x7   : > { %170 = sbr.rel (%p167_p3) target bundleno = 358 (0x166), region = 32  ;;  %p205_p4 = scmp.lt.s32.totalorder (!%p167_p3), %s506_s6, 7 }
   0xc   : > { %v246_v0 = vld [vmem:[%s733_s1 + $0x18] sm:$0xff]  ;;  %v245_v1 = vld [vmem:[%s733_s1 + $0x10] sm:$0xff]  ;;  %v244_v2 = vld [vmem:[%s733_s1 + $0x8] sm:$0xff]  ;;  %vm247_vm0 = vcmask 261120   ;;  %s741_s6 = smov (!%p205_p4, %s506_s6), 7 }
   0xd   : > { %528 = vmatpush.msra.mxu2 %v246_v0  ;;  %529 = vmatpush.msra.mxu3 %v246_v0  ;;  %v243_v3 = vld [vmem:[%s733_s1] sm:$0xff]  ;;  %v233_v4 = vld [vmem:[%s732_s0 + $0x30] sm:$0xff]  ;;  %v234_v7 = vld [vmem:[%s732_s0 + $0x38] sm:$0xff]  ;;  %s507_s7 = sshll.u32 %s741_s6, 3 }
   0xe   : > { %308 = vmatpush.msra.mxu0 %v246_v0  ;;  %v239_v5 = vld [vmem:[%s732_s0 + $0x60] sm:$0xff]  ;;  %v240_v8 = vld [vmem:[%s732_s0 + $0x68] sm:$0xff]  ;;  %v241_v11 = vld [vmem:[%s732_s0 + $0x70] sm:$0xff]  ;;  %s211_s9 = scalar_lea.vmem %s734_s2, %s507_s7  ;;  %s217_s16 = scalar_lea.vmem %s735_s3, %s507_s7 }
   0xf   : > { %530 = vmatpush.msra.mxu2 %v245_v1  ;;  %531 = vmatpush.msra.mxu3 %v245_v1  ;;  %v227_v6 = vld [vmem:[%s732_s0] sm:$0xff]  ;;  %v228_v9 = vld [vmem:[%s732_s0 + $0x8] sm:$0xff]  ;;  %v229_v12 = vld [vmem:[%s732_s0 + $0x10] sm:$0xff] }
  0x10   : > { %309 = vmatpush.msra.mxu0 %v245_v1  ;;  %v235_v10 = vld [vmem:[%s732_s0 + $0x40] sm:$0xff]  ;;  %v236_v13 = vld [vmem:[%s732_s0 + $0x48] sm:$0xff]  ;;  %v242_v14 = vld [vmem:[%s732_s0 + $0x78] sm:$0xff] }
  0x11   : > { %532 = vmatpush.msra.mxu2 %v244_v2  ;;  %533 = vmatpush.msra.mxu3 %v244_v2  ;;  %v230_v15 = vld [vmem:[%s732_s0 + $0x18] sm:$0xff]  ;;  %v237_v16 = vld [vmem:[%s732_s0 + $0x50] sm:$0xff]  ;;  %v231_v17 = vld [vmem:[%s732_s0 + $0x20] sm:$0xff] }
  0x12   : > { %310 = vmatpush.msra.mxu0 %v244_v2  ;;  %v238_v18 = vld [vmem:[%s732_s0 + $0x58] sm:$0xff]  ;;  %v232_v19 = vld [vmem:[%s732_s0 + $0x28] sm:$0xff]  ;;  %v365_v36 = vld [vmem:[%s211_s9] sm:$0xff] }
  0x13   : > { %534 = vmatpush.msra.mxu2 %v243_v3  ;;  %535 = vmatpush.msra.mxu3 %v243_v3  ;;  %v368_v37 = vld [vmem:[%s211_s9 + $0x18] sm:$0xff]  ;;  %v366_v38 = vld [vmem:[%s211_s9 + $0x8] sm:$0xff]  ;;  %v367_v39 = vld [vmem:[%s211_s9 + $0x10] sm:$0xff] }
  0x14   : > { %516 = vmatmul.msk.f32.vlgmr.msra.gmra.mxu2 %vm247_vm0, %v233_v4  ;;  %522 = vmatmul.msk.f32.vlgmr.msra.gmra.mxu3 %vm247_vm0, %v239_v5 }
  0x15   : > { %311 = vmatpush.msra.mxu0 %v243_v3 }
  0x16   : > { %510 = vmatmul.msk.f32.vlgmr.msra.gmra.mxu0 %vm247_vm0, %v227_v6 }
  0x1c   : > { %517 = vmatmul.msk.f32.gmra.mxu2 %vm247_vm0, %v234_v7  ;;  %523 = vmatmul.msk.f32.gmra.mxu3 %vm247_vm0, %v240_v8 }
  0x1e   : > { %511 = vmatmul.msk.f32.gmra.mxu0 %vm247_vm0, %v228_v9 }
  0x24   : > { %518 = vmatmul.msk.f32.gmra.mxu2 %vm247_vm0, %v235_v10  ;;  %524 = vmatmul.msk.f32.gmra.mxu3 %vm247_vm0, %v241_v11 }
  0x26   : > { %512 = vmatmul.msk.f32.gmra.mxu0 %vm247_vm0, %v229_v12 }
  0x2c   : > { %519 = vmatmul.msk.f32.gmra.mxu2 %vm247_vm0, %v236_v13  ;;  %525 = vmatmul.msk.f32.gmra.mxu3 %vm247_vm0, %v242_v14 }
  0x2e   : > { %513 = vmatmul.msk.f32.gmra.mxu0 %vm247_vm0, %v230_v15 }
  0x34   : > { %520 = vmatmul.msk.f32.gmra.mxu2 %vm247_vm0, %v237_v16 }
  0x36   : > { %514 = vmatmul.msk.f32.gmra.mxu0 %vm247_vm0, %v231_v17 }
  0x3c   : > { %521 = vmatmul.msk.f32.gmra.mxu2 %vm247_vm0, %v238_v18 }
  0x3e   : > { %515 = vmatmul.msk.f32.gmra.mxu0 %vm247_vm0, %v232_v19 }
  0x93   : > { %v313_v20 = vpop.f32.mrf.mxu0 }
  0x97   : > { %v331_v21 = vpop.f32.mrf.mxu2  ;;  %v349_v22 = vpop.f32.mrf.mxu3 }
  0x9b   : > { %v316_v25 = vpop.f32.mrf.mxu0 }
  0x9f   : > { %v334_v23 = vpop.f32.mrf.mxu2  ;;  %v352_v24 = vpop.f32.mrf.mxu3 }
  0xa3   : > { %v319_v28 = vpop.f32.mrf.mxu0 }
  0xa7   : > { %v337_v26 = vpop.f32.mrf.mxu2  ;;  %v355_v27 = vpop.f32.mrf.mxu3 }
  0xab   : > { %v322_v31 = vpop.f32.mrf.mxu0 }
  0xaf   : > { %v340_v29 = vpop.f32.mrf.mxu2  ;;  %v358_v30 = vpop.f32.mrf.mxu3 }
  0xb0   : > { %369 = vmatpush.msra.mxu1 %v358_v30  ;;  %536 = vmatpush.msrb.mxu3 %v358_v30 }
  0xb2   : > { %370 = vmatpush.msra.mxu1 %v355_v27  ;;  %537 = vmatpush.msrb.mxu3 %v355_v27 }
  0xb3   : > { %v325_v34 = vpop.f32.mrf.mxu0 }
  0xb4   : > { %371 = vmatpush.msra.mxu1 %v352_v24  ;;  %538 = vmatpush.msrb.mxu3 %v352_v24 }
  0xb6   : > { %372 = vmatpush.msra.mxu1 %v349_v22  ;;  %539 = vmatpush.msrb.mxu3 %v349_v22 }
  0xb7   : > { %v343_v32 = vpop.f32.mrf.mxu2 }
  0xbb   : > { %v328_v35 = vpop.f32.mrf.mxu0 }
  0xbf   : > { %v346_v33 = vpop.f32.mrf.mxu2 }
  0xc0   : > { %373 = vmatpush.msra.mxu1 %v346_v33  ;;  %540 = vmatpush.msrb.mxu3 %v346_v33 }
  0xc2   : > { %374 = vmatpush.msra.mxu1 %v343_v32  ;;  %541 = vmatpush.msrb.mxu3 %v343_v32 }
  0xc4   : > { %375 = vmatpush.msra.mxu1 %v340_v29  ;;  %542 = vmatpush.msrb.mxu3 %v340_v29 }
  0xc6   : > { %376 = vmatpush.msra.mxu1 %v337_v26  ;;  %543 = vmatpush.msrb.mxu3 %v337_v26 }
  0xc8   : > { %377 = vmatpush.msra.mxu1 %v334_v23  ;;  %544 = vmatpush.msrb.mxu3 %v334_v23 }
  0xca   : > { %378 = vmatpush.msra.mxu1 %v331_v21  ;;  %545 = vmatpush.msrb.mxu3 %v331_v21 }
  0xcc   : > { %379 = vmatpush.msra.mxu1 %v328_v35  ;;  %546 = vmatpush.msrb.mxu3 %v328_v35 }
  0xce   : > { %380 = vmatpush.msra.mxu1 %v325_v34  ;;  %547 = vmatpush.msrb.mxu3 %v325_v34 }
  0xd0   : > { %381 = vmatpush.msra.mxu1 %v322_v31  ;;  %548 = vmatpush.msrb.mxu3 %v322_v31 }
  0xd2   : > { %382 = vmatpush.msra.mxu1 %v319_v28  ;;  %549 = vmatpush.msrb.mxu3 %v319_v28 }
  0xd4   : > { %383 = vmatpush.msra.mxu1 %v316_v25  ;;  %550 = vmatpush.msrb.mxu3 %v316_v25 }
  0xd6   : > { %384 = vmatpush.msra.mxu1 %v313_v20  ;;  %551 = vmatpush.msrb.mxu3 %v313_v20 }
  0xd7   : > { %385 = vmatmul.f32.vlgmr.msra.gmra.mxu1 %v365_v36  ;;  %394 = vmatmul.f32.vlgmr.msrb.gmra.mxu3 %v368_v37 }
  0xdf   : > { %388 = vmatmul.f32.gmra.mxu1 %v366_v38 }
  0xe7   : > { %391 = vmatmul.f32.gmra.mxu1 %v367_v39 }
 0x154   : > { %v386_v40 = vpop.f32.mrf.mxu1 }
 0x155   : > { %413 = vst [vmem:[%s217_s16] sm:$0xff] %v386_v40 }
 0x15a   : > { %v395_v42 = vpop.f32.mrf.mxu3 }
 0x15b   : > { %416 = vst [vmem:[%s217_s16 + $0x18] sm:$0xff] %v395_v42 }
 0x15c   : > { %v389_v41 = vpop.f32.mrf.mxu1 }
 0x15d   : > { %414 = vst [vmem:[%s217_s16 + $0x8] sm:$0xff] %v389_v41 }
 0x164   : > { %v392_v43 = vpop.f32.mrf.mxu1 }
 0x165   : > { %415 = vst [vmem:[%s217_s16 + $0x10] sm:$0xff] %v392_v43 }
 0x166 PF: > { %s13_s14 = sadd.s32 1, %s598_s14   ;;  %s736_s12 = smov %s594_s13 }
 0x167   : > { %p10_p5 = scmp.ge.s32.totalorder %s13_s14, 4   ;;  %s737_s13 = smov %s739_s15 }
 0x169   :  { %12 = sbr.rel (!%p10_p5) target bundleno = 2 (0x2), region = 73 }

</bundles_post_ra>
